<compile_context>
chip_gen: v5e
topology: v5e:2x2
jax: 0.10.0
libtpu: 0.0.40
codegen_flags: <defaults>
</compile_context>

<pallas_src>
import jax
import jax.numpy as jnp
from jax.experimental import pallas as pl
from jax.experimental.pallas import tpu as pltpu

INPUT_SIZE = 408
HIDDEN_SIZE = INPUT_SIZE // 2   # 204
NUM_CLASSES = 13

# Padded (lane/MXU aligned) shapes used inside the kernel.
H_PAD = 256      # hidden 204 -> 256
C_PAD = 128      # classes 13 -> 128 (lane-dense output)


def _round_up(n, m):
    return ((n + m - 1) // m) * m


def classifier_kernel(x_ref, w1_ref, b1_ref, w2_ref, b2_ref, out_ref):
    # fc1: cast x to bf16 in-register (VPU), bf16 MXU matmul, f32 accumulate.
    x_bf = x_ref[...].astype(jnp.bfloat16)
    h = jnp.dot(x_bf, w1_ref[...],
                preferred_element_type=jnp.float32) + b1_ref[...]
    # fc2: bf16 operands, f32 accumulate; padded class lanes biased to -1e30.
    logits = jnp.dot(h.astype(jnp.bfloat16), w2_ref[...],
                     preferred_element_type=jnp.float32) + b2_ref[...]
    # Softmax over the class (last) axis; pad lanes exp() to exactly 0.
    m = jnp.max(logits, axis=-1, keepdims=True)
    e = jnp.exp(logits - m)
    denom = jnp.sum(e, axis=-1, keepdims=True)
    out_ref[...] = (e * (1.0 / denom)).astype(out_ref.dtype)   # exact normalization


def classifier_forward(x, w1, b1, w2, b2, *, block_b=1024):
    """x: (B, 408) f32. w1: (408, 204) (in, out). b1: (1, 204).
    w2: (204, 13). b2: (1, 13). Returns (B, 13) softmax probabilities (f32)."""
    B = x.shape[0]

    # Batch tile: minimize padding waste and align to 16 rows (bf16 sublane
    # pack). With B > block_b the grid has >= 2 tiles, keeping both v7x
    # TensorCores busy via the "parallel" grid axis; sweep block_b 1024-2048.
    n_tiles = max(1, -(-B // block_b))            # ceil(B / block_b)
    TB = _round_up(-(-B // n_tiles), 16)          # round_up(ceil(B / n_tiles), 16)
    Bp = _round_up(B, TB)

    # No K padding and no wrapper-side dtype cast of x; pad the batch only if
    # it isn't a multiple of the tile (padded rows are zeros, sliced off below).
    x_in = x if Bp == B else jnp.pad(x, ((0, Bp - B), (0, 0)))

    # Tiny, resident operands: pad/cast once in the wrapper (negligible traffic).
    w1_p = jnp.zeros((INPUT_SIZE, H_PAD), jnp.bfloat16)
    w1_p = w1_p.at[:, :HIDDEN_SIZE].set(w1.astype(jnp.bfloat16))

    b1_p = jnp.zeros((1, H_PAD), jnp.float32)
    b1_p = b1_p.at[:, :HIDDEN_SIZE].set(b1.astype(jnp.float32))

    w2_p = jnp.zeros((H_PAD, C_PAD), jnp.bfloat16)
    w2_p = w2_p.at[:HIDDEN_SIZE, :NUM_CLASSES].set(w2.astype(jnp.bfloat16))

    # Large-negative bias on padded class lanes => exp() == 0 there.
    b2_p = jnp.full((1, C_PAD), -1e30, jnp.float32)
    b2_p = b2_p.at[:, :NUM_CLASSES].set(b2.astype(jnp.float32))

    out = pl.pallas_call(
        classifier_kernel,
        out_shape=jax.ShapeDtypeStruct((Bp, C_PAD), jnp.float32),
        grid_spec=pltpu.PrefetchScalarGridSpec(
            num_scalar_prefetch=0,
            grid=(Bp // TB,),
            in_specs=[
                pl.BlockSpec((TB, INPUT_SIZE), lambda i: (i, 0)),     # x: batch-tiled, f32
                pl.BlockSpec((INPUT_SIZE, H_PAD), lambda i: (0, 0)),  # w1: resident bf16
                pl.BlockSpec((1, H_PAD), lambda i: (0, 0)),           # b1: resident f32
                pl.BlockSpec((H_PAD, C_PAD), lambda i: (0, 0)),       # w2: resident bf16
                pl.BlockSpec((1, C_PAD), lambda i: (0, 0)),           # b2: resident f32
            ],
            out_specs=pl.BlockSpec((TB, C_PAD), lambda i: (i, 0)),    # lane-dense store
        ),
        compiler_params=pltpu.CompilerParams(
            dimension_semantics=("parallel",),   # shard batch tiles across TCs (v7x)
            vmem_limit_bytes=32 * 1024 * 1024,
        ),
    )(x_in, w1_p, b1_p, w2_p, b2_p)

    # Slice off batch padding and the padded class lanes.
    return out[:B, :NUM_CLASSES]


def init_params(key):
    """Deterministic init mirroring nn.Linear's U(-1/sqrt(fan_in), 1/sqrt(fan_in)).
    Weights stored as (in, out) so the kernel computes x @ W + b."""
    k1, k2, k3, k4 = jax.random.split(key, 4)
    bound1 = 1.0 / jnp.sqrt(INPUT_SIZE)
    bound2 = 1.0 / jnp.sqrt(HIDDEN_SIZE)
    w1 = jax.random.uniform(k1, (INPUT_SIZE, HIDDEN_SIZE), jnp.float32, -bound1, bound1)
    b1 = jax.random.uniform(k2, (1, HIDDEN_SIZE), jnp.float32, -bound1, bound1)
    w2 = jax.random.uniform(k3, (HIDDEN_SIZE, NUM_CLASSES), jnp.float32, -bound2, bound2)
    b2 = jax.random.uniform(k4, (1, NUM_CLASSES), jnp.float32, -bound2, bound2)
    return w1, b1, w2, b2


def _reference(x, w1, b1, w2, b2):
    h = x @ w1 + b1
    logits = h @ w2 + b2
    return jax.nn.softmax(logits, axis=-1)


if __name__ == "__main__":
    key = jax.random.PRNGKey(0)
    k_x, k_p = jax.random.split(key)

    B = 8
    x = jax.random.normal(k_x, (B, INPUT_SIZE), jnp.float32)
    w1, b1, w2, b2 = init_params(k_p)

    out = classifier_forward(x, w1, b1, w2, b2)
    out = jax.block_until_ready(out)

    # sanity: shape, rows sum to 1 (exact normalization), matches pure-JAX f32
    # reference (bf16 matmul operands => loose tolerance)
    assert out.shape == (B, NUM_CLASSES)
    assert jnp.allclose(jnp.sum(out, axis=-1), 1.0, atol=1e-4)
    ref = _reference(x, w1, b1, w2, b2)
    assert jnp.allclose(out, ref, atol=1e-2), float(jnp.max(jnp.abs(out - ref)))

    print("KERNEL_OK")
</pallas_src>

<mosaic_0001>
module attributes {stable_mosaic.version = 11 : i64} {
  func.func @classifier_kernel(%arg0: i32, %arg1: memref<16x408xf32, #tpu.memory_space<vmem>>, %arg2: memref<408x256xbf16, #tpu.memory_space<vmem>>, %arg3: memref<1x256xf32, #tpu.memory_space<vmem>>, %arg4: memref<256x128xbf16, #tpu.memory_space<vmem>>, %arg5: memref<1x128xf32, #tpu.memory_space<vmem>>, %arg6: memref<16x128xf32, #tpu.memory_space<vmem>>) attributes {dimension_semantics = [#tpu.dimension_semantics<parallel>], iteration_bounds = array<i64: 1>, scalar_prefetch = 0 : i64, scratch_operands = 0 : i64, tpu.core_type = #tpu.core_type<tc>, window_params = [{transform_indices = @transform_0, window_bounds = array<i64: 16, 408>}, {pipeline_mode = #tpu.pipeline_mode<synchronous>, transform_indices = @transform_1, window_bounds = array<i64: 408, 256>}, {pipeline_mode = #tpu.pipeline_mode<synchronous>, transform_indices = @transform_2, window_bounds = array<i64: 1, 256>}, {pipeline_mode = #tpu.pipeline_mode<synchronous>, transform_indices = @transform_3, window_bounds = array<i64: 256, 128>}, {pipeline_mode = #tpu.pipeline_mode<synchronous>, transform_indices = @transform_4, window_bounds = array<i64: 1, 128>}, {transform_indices = @transform_5, window_bounds = array<i64: 16, 128>}]} {
    %c0 = arith.constant 0 : index
    %c0_0 = arith.constant 0 : index
    %0 = vector.load %arg1[%c0, %c0_0] : memref<16x408xf32, #tpu.memory_space<vmem>>, vector<16x408xf32>
    %1 = arith.truncf %0 : vector<16x408xf32> to vector<16x408xbf16>
    %c0_1 = arith.constant 0 : index
    %c0_2 = arith.constant 0 : index
    %2 = vector.load %arg2[%c0_1, %c0_2] : memref<408x256xbf16, #tpu.memory_space<vmem>>, vector<408x256xbf16>
    %cst = arith.constant dense<0.000000e+00> : vector<16x256xf32>
    %3 = tpu.matmul %1, %2, %cst {dimension_numbers = #tpu.dot_dimension_numbers<[1], [0], [0], [1], [0, 0, 1, 1], [], []>} : vector<16x408xbf16>, vector<408x256xbf16>, vector<16x256xf32> -> vector<16x256xf32>
    %c0_3 = arith.constant 0 : index
    %c0_4 = arith.constant 0 : index
    %4 = vector.load %arg3[%c0_3, %c0_4] : memref<1x256xf32, #tpu.memory_space<vmem>>, vector<1x256xf32>
    %5 = vector.broadcast %4 : vector<1x256xf32> to vector<16x256xf32>
    %6 = arith.addf %3, %5 : vector<16x256xf32>
    %7 = arith.truncf %6 : vector<16x256xf32> to vector<16x256xbf16>
    %c0_5 = arith.constant 0 : index
    %c0_6 = arith.constant 0 : index
    %8 = vector.load %arg4[%c0_5, %c0_6] : memref<256x128xbf16, #tpu.memory_space<vmem>>, vector<256x128xbf16>
    %cst_7 = arith.constant dense<0.000000e+00> : vector<16x128xf32>
    %9 = tpu.matmul %7, %8, %cst_7 {dimension_numbers = #tpu.dot_dimension_numbers<[1], [0], [0], [1], [0, 0, 1, 1], [], []>} : vector<16x256xbf16>, vector<256x128xbf16>, vector<16x128xf32> -> vector<16x128xf32>
    %c0_8 = arith.constant 0 : index
    %c0_9 = arith.constant 0 : index
    %10 = vector.load %arg5[%c0_8, %c0_9] : memref<1x128xf32, #tpu.memory_space<vmem>>, vector<1x128xf32>
    %11 = vector.broadcast %10 : vector<1x128xf32> to vector<16x128xf32>
    %12 = arith.addf %9, %11 : vector<16x128xf32>
    %cst_10 = arith.constant dense<0xFF800000> : vector<16xf32>
    %13 = vector.multi_reduction <maximumf>, %12, %cst_10 [1] : vector<16x128xf32> to vector<16xf32>
    %14 = vector.shape_cast %13 : vector<16xf32> to vector<16x1xf32>
    %15 = vector.broadcast %14 : vector<16x1xf32> to vector<16x128xf32>
    %16 = arith.subf %12, %15 : vector<16x128xf32>
    %17 = math.exp %16 : vector<16x128xf32>
    %cst_11 = arith.constant dense<0.000000e+00> : vector<16xf32>
    %18 = vector.multi_reduction <add>, %17, %cst_11 [1] : vector<16x128xf32> to vector<16xf32>
    %19 = vector.shape_cast %18 : vector<16xf32> to vector<16x1xf32>
    %cst_12 = arith.constant 1.000000e+00 : f32
    %20 = vector.broadcast %cst_12 : f32 to vector<16x1xf32>
    %21 = arith.divf %20, %19 : vector<16x1xf32>
    %22 = vector.broadcast %21 : vector<16x1xf32> to vector<16x128xf32>
    %23 = arith.mulf %17, %22 : vector<16x128xf32>
    %c0_13 = arith.constant 0 : index
    %c0_14 = arith.constant 0 : index
    %24 = vector.load %arg6[%c0_13, %c0_14] : memref<16x128xf32, #tpu.memory_space<vmem>>, vector<16x128xf32>
    tpu.vector_store %arg6[%c0_13, %c0_14], %23 {strides = array<i32>} : memref<16x128xf32, #tpu.memory_space<vmem>>, vector<16x128xf32>,
    return
  }
  func.func @transform_0(%arg0: i32) -> (i32, i32) {
    %c0_i32 = arith.constant 0 : i32
    %c0_i32_0 = arith.constant 0 : i32
    return %arg0, %c0_i32 : i32, i32
  }
  func.func @transform_1(%arg0: i32) -> (i32, i32) {
    %c0_i32 = arith.constant 0 : i32
    %c0_i32_0 = arith.constant 0 : i32
    %c0_i32_1 = arith.constant 0 : i32
    return %c0_i32, %c0_i32_0 : i32, i32
  }
  func.func @transform_2(%arg0: i32) -> (i32, i32) {
    %c0_i32 = arith.constant 0 : i32
    %c0_i32_0 = arith.constant 0 : i32
    %c0_i32_1 = arith.constant 0 : i32
    return %c0_i32, %c0_i32_0 : i32, i32
  }
  func.func @transform_3(%arg0: i32) -> (i32, i32) {
    %c0_i32 = arith.constant 0 : i32
    %c0_i32_0 = arith.constant 0 : i32
    %c0_i32_1 = arith.constant 0 : i32
    return %c0_i32, %c0_i32_0 : i32, i32
  }
  func.func @transform_4(%arg0: i32) -> (i32, i32) {
    %c0_i32 = arith.constant 0 : i32
    %c0_i32_0 = arith.constant 0 : i32
    %c0_i32_1 = arith.constant 0 : i32
    return %c0_i32, %c0_i32_0 : i32, i32
  }
  func.func @transform_5(%arg0: i32) -> (i32, i32) {
    %c0_i32 = arith.constant 0 : i32
    %c0_i32_0 = arith.constant 0 : i32
    return %arg0, %c0_i32 : i32, i32
  }
}

</mosaic_0001>

<bundles_post_ra>
// kernel: tpu_custom_call.1
= control target key start
LH: loop header
LB: loop body
LE: loop exit
PB: predicated region body
PF: predicated region fallthrough
CT: control target
= control target key end

     0   :  { %10 = vsyncpa [#allocation3], 0  ;;  %s1330_s0 = inlined_call_operand.hbm [shape: f32[16,408], index: 0, kind: input, shape index: {}]   ;;  %s1331_s1 = inlined_call_operand.hbm [shape: bf16[408,256], index: 1, kind: input, shape index: {}]   ;;  %s1332_s2 = inlined_call_operand.hbm [shape: f32[1,256], index: 2, kind: input, shape index: {}]   ;;  %s1333_s3 = inlined_call_operand.hbm [shape: bf16[256,128], index: 3, kind: input, shape index: {}]   ;;  %s1334_s4 = inlined_call_operand.vmem [shape: f32[1,128], index: 4, kind: input, shape index: {}]   ;;  %s1335_s5 = inlined_call_operand.hbm [shape: f32[16,128], index: 5, kind: output, shape index: {}]  }
   0x1   :  { %11 = vsyncpa [#allocation6], 0 }
   0x2   :  { %12 = vsyncpa [#allocation9], 0  ;;  %s31_s20 = sshll.u32 %s1331_s1, 4  ;;  %s32_s20 = int_to_ptr.hbm [resolvable:$true] %s31_s20 }
   0x3   :  { %13 = vsyncpa [#allocation4], 0  ;;  %s1241_s21 = smov [#allocation5]   ;;  %s18_s25 = sshll.u32 %s1330_s0, 4  ;;  %s19_s25 = int_to_ptr.hbm [resolvable:$true] %s18_s25 }
   0x4   :  { %s33_s22 = sshll.u32 %s1241_s21, 4  ;;  %s1242_s26 = smov 128   ;;  %s34_s22 = int_to_ptr.vmem [resolvable:$true] %s33_s22 }
   0x5   :  { %s1243_s27 = smov 8   ;;  %s1244_s28 = smov [#allocation2]  }
   0x6   :  { %39 = dma.hbm_to_vmem [thread:$0]  %s32_s20, 6528, %s34_s22, [#allocation6], %s1242_s26, %s1242_s26, %s1243_s27  }
   0x7   :  { %s20_s29 = sshll.u32 %s1244_s28, 4  ;;  %s1245_s1 = smov 512   ;;  %s21_s29 = int_to_ptr.vmem [resolvable:$true] %s20_s29 }
   0x8   :  { %s1246_s30 = smov 32   ;;  %s45_s8 = sshll.u32 %s1332_s2, 4  ;;  %s46_s8 = int_to_ptr.hbm [resolvable:$true] %s45_s8 }
   0x9   :  { %26 = dma.hbm_to_vmem [thread:$0]  %s19_s25, 1024, %s21_s29, [#allocation3], %s1245_s1, %s1245_s1, %s1246_s30  }
   0xa   :  { %s1247_s9 = smov [#allocation7]   ;;  %s55_s12 = sshll.u32 %s1333_s3, 4  ;;  %s56_s12 = int_to_ptr.hbm [resolvable:$true] %s55_s12 }
   0xb   :  { %s47_s0 = sshll.u32 %s1247_s9, 4  ;;  %s1248_s13 = smov [#allocation8]   ;;  %s48_s0 = int_to_ptr.vmem [resolvable:$true] %s47_s0 }
   0xc   :  { %50 = dma.hbm_to_vmem [thread:$0]  %s46_s8, 32, %s48_s0, [#allocation6]  }
   0xd   :  { %s57_s14 = sshll.u32 %s1248_s13, 4  ;;  %s1249_s15 = smov 64   ;;  %s58_s14 = int_to_ptr.vmem [resolvable:$true] %s57_s14 }
   0xe   :  { %s1250_s16 = smov 4  }
   0xf   :  { %63 = dma.hbm_to_vmem [thread:$0]  %s56_s12, 2048, %s58_s14, [#allocation9], %s1249_s15, %s1249_s15, %s1250_s16  }
  0x10   :  { %1233 = dma.done.wait [#allocation3], 1024  }
  0x11   :  { %1234 = vsyncadd [#allocation3], 4294966272 }
  0x12   :  { %1235 = dma.done.wait [#allocation6], 6560  }
  0x13   :  { %1236 = vsyncadd [#allocation6], 4294960736 }
  0x14   :  { %1237 = dma.done.wait [#allocation9], 2048  }
  0x15   :  { %1238 = vsyncadd [#allocation9], 4294965248  ;;  %v819_v0 = vld [vmem:[#allocation5 + $0x70] sm:$0xf]  ;;  %v1042_v1 = vld [vmem:[#allocation5 + $0x74] sm:$0xf0] }
  0x16   :  { %v883_v2 = vld [vmem:[#allocation5 + $0xf0] sm:$0xf]  ;;  %v820_v3 = vor.u32 %v1042_v1, %v819_v0  ;;  %v1058_v4 = vld [vmem:[#allocation5 + $0xf4] sm:$0xf0]  ;;  %v811_v9 = vld [vmem:[#allocation5 + $0x60] sm:$0xf] }
  0x17   :  { %v947_v5 = vld [vmem:[#allocation5 + $0x170] sm:$0xf]  ;;  %v1074_v6 = vld [vmem:[#allocation5 + $0x174] sm:$0xf0]  ;;  %v884_v7 = vor.u32 %v1058_v4, %v883_v2  ;;  %v1040_v10 = vld [vmem:[#allocation5 + $0x64] sm:$0xf0] }
  0x18   :  { %v948_v8 = vor.u32 %v1074_v6, %v947_v5  ;;  %v875_v11 = vld [vmem:[#allocation5 + $0xe0] sm:$0xf]  ;;  %418 = vmatpush.bf16.msra.mxu0 %v820_v3  ;;  %v812_v12 = vor.u32 %v1040_v10, %v811_v9  ;;  %v1056_v13 = vld [vmem:[#allocation5 + $0xe4] sm:$0xf0]  ;;  %v803_v18 = vld [vmem:[#allocation5 + $0x50] sm:$0xf] }
  0x19   :  { %v939_v14 = vld [vmem:[#allocation5 + $0x160] sm:$0xf]  ;;  %v1072_v15 = vld [vmem:[#allocation5 + $0x164] sm:$0xf0]  ;;  %432 = vmatpush.bf16.msra.mxu1 %v884_v7  ;;  %v876_v16 = vor.u32 %v1056_v13, %v875_v11  ;;  %v1038_v19 = vld [vmem:[#allocation5 + $0x54] sm:$0xf0] }
  0x1a   :  { %446 = vmatpush.bf16.msra.mxu2 %v948_v8  ;;  %v940_v17 = vor.u32 %v1072_v15, %v939_v14  ;;  %v867_v20 = vld [vmem:[#allocation5 + $0xd0] sm:$0xf]  ;;  %v1054_v21 = vld [vmem:[#allocation5 + $0xd4] sm:$0xf0]  ;;  %v804_v25 = vor.u32 %v1038_v19, %v803_v18  ;;  %vm411_vm0 = vcmask 1043456   ;;  %vm407_vm1 = vcmask 195584  }
  0x1b   :  { %v931_v22 = vld [vmem:[#allocation5 + $0x150] sm:$0xf]  ;;  %v1070_v23 = vld [vmem:[#allocation5 + $0x154] sm:$0xf0]  ;;  %v868_v27 = vor.u32 %v1054_v21, %v867_v20  ;;  %v795_v29 = vld [vmem:[#allocation5 + $0x40] sm:$0xf] }
  0x1c   :  { %v1297_v24 = vld [vmem:[#allocation5 + $0x190] sm:$0xff]  ;;  %419 = vmatpush.bf16.msra.mxu0 %v812_v12  ;;  %v932_v28 = vor.u32 %v1070_v23, %v931_v22  ;;  %v1036_v30 = vld [vmem:[#allocation5 + $0x44] sm:$0xf0]  ;;  %v859_v31 = vld [vmem:[#allocation5 + $0xc0] sm:$0xf]  ;;  %s746_s20 = sshll.u32 %s1335_s5, 4  ;;  %s747_s20 = int_to_ptr.hbm [resolvable:$true] %s746_s20 }
  0x1d   :  { %v303_v26 = vunpack.c.l.b16 %v1297_v24  ;;  %433 = vmatpush.bf16.msra.mxu1 %v876_v16  ;;  %v1052_v33 = vld [vmem:[#allocation5 + $0xc4] sm:$0xf0]  ;;  %v923_v34 = vld [vmem:[#allocation5 + $0x140] sm:$0xf]  ;;  %v796_v39 = vor.u32 %v1036_v30, %v795_v29  ;;  %v1041_v40 = vld [vmem:[#allocation5 + $0x74] sm:$0xf] }
  0x1e   :  { %447 = vmatpush.bf16.msra.mxu2 %v940_v17  ;;  %v1068_v35 = vld [vmem:[#allocation5 + $0x144] sm:$0xf0]  ;;  %v955_v36 = vld [vmem:[#allocation5 + $0x180] sm:$0xf]  ;;  %v821_v41 = vld [vmem:[#allocation5 + $0x78] sm:$0xf0]  ;;  %v860_v42 = vor.u32 %v1052_v33, %v859_v31 }
  0x1f   :  { %v355_v32 = vpack.c.b16 %v303_v26, %v303_v26  ;;  %v1076_v37 = vld [vmem:[#allocation5 + $0x184] sm:$0xf0]  ;;  %v924_v43 = vor.u32 %v1068_v35, %v923_v34  ;;  %v787_v44 = vld [vmem:[#allocation5 + $0x30] sm:$0xf]  ;;  %v1034_v45 = vld [vmem:[#allocation5 + $0x34] sm:$0xf0]  ;;  %v824_v51 = vor.u32 %v1041_v40, %v821_v41 }
  0x20   :  { %420 = vmatpush.bf16.msra.mxu0 %v804_v25  ;;  %v851_v46 = vld [vmem:[#allocation5 + $0xb0] sm:$0xf]  ;;  %v956_v47 = vor.u32 %v1076_v37, %v955_v36  ;;  %v1050_v48 = vld [vmem:[#allocation5 + $0xb4] sm:$0xf0]  ;;  %v788_v52 = vor.u32 %v1034_v45, %v787_v44  ;;  %v1039_v53 = vld [vmem:[#allocation5 + $0x64] sm:$0xf] }
  0x21   :  { %v413_v38 = vsel %vm411_vm0, %v355_v32, 0  ;;  %434 = vmatpush.bf16.msra.mxu1 %v868_v27  ;;  %v915_v49 = vld [vmem:[#allocation5 + $0x130] sm:$0xf]  ;;  %v1066_v50 = vld [vmem:[#allocation5 + $0x134] sm:$0xf0]  ;;  %v852_v55 = vor.u32 %v1050_v48, %v851_v46  ;;  %v304_v27 = vunpack.c.h.b16 %v1297_v24  ;;  %v83_v37 = vld [vmem:[#allocation2] sm:$0xff] }
  0x22   :  { %448 = vmatpush.bf16.msra.mxu2 %v932_v28  ;;  %466 = vmatpush.bf16.msra.mxu3 %v413_v38  ;;  %v813_v54 = vld [vmem:[#allocation5 + $0x68] sm:$0xf0]  ;;  %v916_v56 = vor.u32 %v1066_v50, %v915_v49  ;;  %v779_v57 = vld [vmem:[#allocation5 + $0x20] sm:$0xf]  ;;  %v1032_v58 = vld [vmem:[#allocation5 + $0x24] sm:$0xf0] }
  0x23   :  { %v843_v59 = vld [vmem:[#allocation5 + $0xa0] sm:$0xf]  ;;  %v1048_v60 = vld [vmem:[#allocation5 + $0xa4] sm:$0xf0]  ;;  %v816_v63 = vor.u32 %v1039_v53, %v813_v54  ;;  %v86_v0 = vld [vmem:[#allocation2 + $0x18] sm:$0xff]  ;;  %v780_v1 = vor.u32 %v1032_v58, %v779_v57 }
  0x24   :  { %421 = vmatpush.bf16.msra.mxu0 %v796_v39  ;;  %v907_v61 = vld [vmem:[#allocation5 + $0x120] sm:$0xf]  ;;  %v1064_v62 = vld [vmem:[#allocation5 + $0x124] sm:$0xf0]  ;;  %v1037_v2 = vld [vmem:[#allocation5 + $0x54] sm:$0xf]  ;;  %v844_v5 = vor.u32 %v1048_v60, %v843_v59 }
  0x25   :  { %435 = vmatpush.bf16.msra.mxu1 %v860_v42  ;;  %v805_v3 = vld [vmem:[#allocation5 + $0x58] sm:$0xf0]  ;;  %v771_v4 = vld [vmem:[#allocation5 + $0x10] sm:$0xf]  ;;  %v908_v6 = vor.u32 %v1064_v62, %v907_v61  ;;  %v1030_v7 = vld [vmem:[#allocation5 + $0x14] sm:$0xf0] }
  0x26   :  { %449 = vmatpush.bf16.msra.mxu2 %v924_v43  ;;  %467 = vmatpush.bf16.msra.mxu3 %v956_v47  ;;  %v835_v8 = vld [vmem:[#allocation5 + $0x90] sm:$0xf]  ;;  %v90_v9 = vld [vmem:[#allocation2 + $0x38] sm:$0xff]  ;;  %v808_v14 = vor.u32 %v1037_v2, %v805_v3  ;;  %v1035_v15 = vld [vmem:[#allocation5 + $0x44] sm:$0xf]  ;;  %v772_v17 = vor.u32 %v1030_v7, %v771_v4  ;;  %v356_v43 = vpack.c.b16 %v304_v27, %v304_v27 }
  0x27   :  { %v1046_v10 = vld [vmem:[#allocation5 + $0x94] sm:$0xf0]  ;;  %v899_v11 = vld [vmem:[#allocation5 + $0x110] sm:$0xf]  ;;  %v1301_v13 = vpack.c.bf16 %v90_v9, %v86_v0  ;;  %v797_v16 = vld [vmem:[#allocation5 + $0x48] sm:$0xf0] }
  0x28   :  { %422 = vmatpush.bf16.msra.mxu0 %v788_v52  ;;  %v1062_v12 = vld [vmem:[#allocation5 + $0x114] sm:$0xf0]  ;;  %v763_v18 = vld [vmem:[#allocation5] sm:$0xf]  ;;  %v1028_v19 = vld [vmem:[#allocation5 + $0x4] sm:$0xf0]  ;;  %v836_v21 = vor.u32 %v1046_v10, %v835_v8  ;;  %v800_v31 = vor.u32 %v1035_v15, %v797_v16 }
  0x29   :  { %436 = vmatpush.bf16.msra.mxu1 %v852_v55  ;;  %v827_v20 = vld [vmem:[#allocation5 + $0x80] sm:$0xf]  ;;  %961 = vmatmul.msk.bf16.vlgmr.msra.gmra.mxu3 %vm407_vm1, %v1301_v13  ;;  %v900_v22 = vor.u32 %v1062_v12, %v899_v11  ;;  %v1044_v23 = vld [vmem:[#allocation5 + $0x84] sm:$0xf0]  ;;  %v1033_v28 = vld [vmem:[#allocation5 + $0x34] sm:$0xf]  ;;  %v764_v35 = vor.u32 %v1028_v19, %v763_v18 }
  0x2a   :  { %474 = vmatpush.bf16.msrb.mxu3 %v824_v51  ;;  %450 = vmatpush.bf16.msra.mxu2 %v916_v56  ;;  %v891_v25 = vld [vmem:[#allocation5 + $0x100] sm:$0xf]  ;;  %v1060_v26 = vld [vmem:[#allocation5 + $0x104] sm:$0xf0]  ;;  %v789_v29 = vld [vmem:[#allocation5 + $0x38] sm:$0xf0]  ;;  %v828_v39 = vor.u32 %v1044_v23, %v827_v20 }
  0x2b   :  { %v1057_v30 = vld [vmem:[#allocation5 + $0xf4] sm:$0xf]  ;;  %v885_v32 = vld [vmem:[#allocation5 + $0xf8] sm:$0xf0]  ;;  %v87_v38 = vld [vmem:[#allocation2 + $0x20] sm:$0xff]  ;;  %v892_v40 = vor.u32 %v1060_v26, %v891_v25  ;;  %v792_v47 = vor.u32 %v1033_v28, %v789_v29  ;;  %v416_v56 = vsel %vm411_vm0, %v356_v43, 0 }
  0x2c   :  { %423 = vmatpush.bf16.msra.mxu0 %v780_v1  ;;  %v1073_v33 = vld [vmem:[#allocation5 + $0x174] sm:$0xf]  ;;  %v949_v34 = vld [vmem:[#allocation5 + $0x178] sm:$0xf0]  ;;  %v84_v42 = vld [vmem:[#allocation2 + $0x8] sm:$0xff]  ;;  %v888_v44 = vor.u32 %v1057_v30, %v885_v32  ;;  %v1306_v48 = vpack.c.bf16 %v87_v38, %v83_v37 }
  0x2d   :  { %437 = vmatpush.bf16.msra.mxu1 %v844_v5  ;;  %v85_v36 = vld [vmem:[#allocation2 + $0x10] sm:$0xff]  ;;  %v88_v24 = vld [vmem:[#allocation2 + $0x28] sm:$0xff]  ;;  %v952_v45 = vor.u32 %v1073_v33, %v949_v34  ;;  %v1055_v46 = vld [vmem:[#allocation5 + $0xe4] sm:$0xf] }
  0x2e   :  { %475 = vmatpush.bf16.msrb.mxu3 %v816_v63  ;;  %451 = vmatpush.bf16.msra.mxu2 %v908_v6  ;;  %v89_v41 = vld [vmem:[#allocation2 + $0x30] sm:$0xff]  ;;  %v877_v49 = vld [vmem:[#allocation5 + $0xe8] sm:$0xf0]  ;;  %v1071_v50 = vld [vmem:[#allocation5 + $0x164] sm:$0xf]  ;;  %v1310_v55 = vpack.c.bf16 %v88_v24, %v84_v42 }
  0x2f   :  { %v941_v51 = vld [vmem:[#allocation5 + $0x168] sm:$0xf0]  ;;  %v1308_v52 = vpack.c.bf16 %v89_v41, %v85_v36  ;;  %v1031_v53 = vld [vmem:[#allocation5 + $0x24] sm:$0xf]  ;;  %v880_v57 = vor.u32 %v1055_v46, %v877_v49  ;;  %v1053_v59 = vld [vmem:[#allocation5 + $0xd4] sm:$0xf] }
  0x30   :  { %424 = vmatpush.bf16.msra.mxu0 %v772_v17  ;;  %v781_v54 = vld [vmem:[#allocation5 + $0x28] sm:$0xf0]  ;;  %v944_v58 = vor.u32 %v1071_v50, %v941_v51  ;;  %v1075_v60 = vld [vmem:[#allocation5 + $0x184] sm:$0xf]  ;;  %v869_v63 = vld [vmem:[#allocation5 + $0xd8] sm:$0xf0] }
  0x31   :  { %438 = vmatpush.bf16.msra.mxu1 %v836_v21  ;;  %v957_v61 = vld [vmem:[#allocation5 + $0x188] sm:$0xf0]  ;;  %v784_v62 = vor.u32 %v1031_v53, %v781_v54  ;;  %v1069_v0 = vld [vmem:[#allocation5 + $0x154] sm:$0xf]  ;;  %v933_v1 = vld [vmem:[#allocation5 + $0x158] sm:$0xf0]  ;;  %v872_v5 = vor.u32 %v1053_v59, %v869_v63 }
  0x32   :  { %476 = vmatpush.bf16.msrb.mxu3 %v808_v14  ;;  %452 = vmatpush.bf16.msra.mxu2 %v900_v22  ;;  %v1029_v2 = vld [vmem:[#allocation5 + $0x14] sm:$0xf]  ;;  %v773_v3 = vld [vmem:[#allocation5 + $0x18] sm:$0xf0]  ;;  %v960_v4 = vor.u32 %v1075_v60, %v957_v61  ;;  %v936_v6 = vor.u32 %v1069_v0, %v933_v1  ;;  %v1051_v7 = vld [vmem:[#allocation5 + $0xc4] sm:$0xf] }
  0x33   :  { %v776_v8 = vor.u32 %v1029_v2, %v773_v3  ;;  %v861_v9 = vld [vmem:[#allocation5 + $0xc8] sm:$0xf0]  ;;  %v1067_v10 = vld [vmem:[#allocation5 + $0x144] sm:$0xf]  ;;  %v1049_v18 = vld [vmem:[#allocation5 + $0xb4] sm:$0xf] }
  0x34   :  { %425 = vmatpush.bf16.msra.mxu0 %v764_v35  ;;  %v925_v11 = vld [vmem:[#allocation5 + $0x148] sm:$0xf0]  ;;  %v1027_v12 = vld [vmem:[#allocation5 + $0x4] sm:$0xf]  ;;  %v864_v15 = vor.u32 %v1051_v7, %v861_v9  ;;  %v853_v19 = vld [vmem:[#allocation5 + $0xb8] sm:$0xf0] }
  0x35   :  { %439 = vmatpush.bf16.msra.mxu1 %v828_v39  ;;  %v765_v14 = vld [vmem:[#allocation5 + $0x8] sm:$0xf0]  ;;  %v928_v16 = vor.u32 %v1067_v10, %v925_v11  ;;  %v1065_v20 = vld [vmem:[#allocation5 + $0x134] sm:$0xf]  ;;  %v917_v21 = vld [vmem:[#allocation5 + $0x138] sm:$0xf0]  ;;  %v856_v23 = vor.u32 %v1049_v18, %v853_v19 }
  0x36   :  { %477 = vmatpush.bf16.msrb.mxu3 %v800_v31  ;;  %453 = vmatpush.bf16.msra.mxu2 %v892_v40  ;;  %v768_v17 = vor.u32 %v1027_v12, %v765_v14  ;;  %v1084_v22 = vld [vmem:[#allocation8 + $0x38] sm:$0xff]  ;;  %v920_v25 = vor.u32 %v1065_v20, %v917_v21  ;;  %v1047_v26 = vld [vmem:[#allocation5 + $0xa4] sm:$0xf]  ;;  %v845_v27 = vld [vmem:[#allocation5 + $0xa8] sm:$0xf0] }
  0x37   :  { %426 = vmatmul.bf16.vlgmr.msra.gmra.mxu0 %v1306_v48  ;;  %v1063_v28 = vld [vmem:[#allocation5 + $0x124] sm:$0xf]  ;;  %v909_v29 = vld [vmem:[#allocation5 + $0x128] sm:$0xf0]  ;;  %v848_v31 = vor.u32 %v1047_v26, %v845_v27  ;;  %v1045_v33 = vld [vmem:[#allocation5 + $0x94] sm:$0xf] }
  0x38   :  { %488 = vmatpush.bf16.msrb.mxu0 %v888_v44  ;;  %440 = vmatmul.bf16.vlgmr.msra.gmra.mxu1 %v1310_v55  ;;  %v1083_v30 = vld [vmem:[#allocation8 + $0x30] sm:$0xff]  ;;  %v912_v32 = vor.u32 %v1063_v28, %v909_v29  ;;  %v837_v34 = vld [vmem:[#allocation5 + $0x98] sm:$0xf0]  ;;  %v1061_v35 = vld [vmem:[#allocation5 + $0x114] sm:$0xf] }
  0x39   :  { %502 = vmatpush.bf16.msrb.mxu1 %v952_v45  ;;  %454 = vmatmul.bf16.vlgmr.msra.gmra.mxu2 %v1308_v52  ;;  %v901_v36 = vld [vmem:[#allocation5 + $0x118] sm:$0xf0]  ;;  %v1082_v37 = vld [vmem:[#allocation8 + $0x28] sm:$0xff]  ;;  %v840_v38 = vor.u32 %v1045_v33, %v837_v34  ;;  %v829_v41 = vld [vmem:[#allocation5 + $0x88] sm:$0xf0] }
  0x3a   :  { %478 = vmatpush.bf16.msrb.mxu3 %v792_v47  ;;  %522 = vmatpush.bf16.msrb.mxu2 %v416_v56  ;;  %v904_v39 = vor.u32 %v1061_v35, %v901_v36  ;;  %v1043_v40 = vld [vmem:[#allocation5 + $0x84] sm:$0xf]  ;;  %v893_v24 = vld [vmem:[#allocation5 + $0x108] sm:$0xf0]  ;;  %v1080_v45 = vld [vmem:[#allocation8 + $0x18] sm:$0xff] }
  0x3b   :  { %v1059_v42 = vld [vmem:[#allocation5 + $0x104] sm:$0xf]  ;;  %v832_v43 = vor.u32 %v1043_v40, %v829_v41  ;;  %v1079_v46 = vld [vmem:[#allocation8 + $0x10] sm:$0xff]  ;;  %v1077_v49 = vld [vmem:[#allocation8] sm:$0xff] }
  0x3c   :  { %489 = vmatpush.bf16.msrb.mxu0 %v880_v57  ;;  %v896_v44 = vor.u32 %v1059_v42, %v893_v24  ;;  %v1078_v47 = vld [vmem:[#allocation8 + $0x8] sm:$0xff]  ;;  %v1091_v50 = vld [vmem:[#allocation8 + $0x70] sm:$0xff]  ;;  %v1089_v53 = vld [vmem:[#allocation8 + $0x60] sm:$0xff] }
  0x3d   :  { %503 = vmatpush.bf16.msrb.mxu1 %v944_v58  ;;  %v1090_v51 = vld [vmem:[#allocation8 + $0x68] sm:$0xff]  ;;  %v146_v54 = vld [vmem:[#allocation7] sm:$0x3]  ;;  %v1087_v58 = vld [vmem:[#allocation8 + $0x50] sm:$0xff] }
  0x3e   :  { %479 = vmatpush.bf16.msrb.mxu3 %v784_v62  ;;  %523 = vmatpush.bf16.msrb.mxu2 %v960_v4  ;;  %v148_v57 = vperm.slane %v146_v54, 0  ;;  %v1086_v62 = vld [vmem:[#allocation8 + $0x48] sm:$0xff]  ;;  %v1085_v3 = vld [vmem:[#allocation8 + $0x40] sm:$0xff]  ;;  %v149_v14 = vperm.slane %v146_v54, 1 }
  0x3f   :  { %v1104_v33 = vld [vmem:[%s1334_s4] ss:$0 sm:$0xff]  ;;  %s1251_s4 = smov [#allocation10]  }
  0x40   :  { %490 = vmatpush.bf16.msrb.mxu0 %v872_v5  ;;  %s744_s17 = sshll.u32 %s1251_s4, 4  ;;  %s745_s17 = int_to_ptr.vmem [resolvable:$true] %s744_s17 }
  0x41   :  { %504 = vmatpush.bf16.msrb.mxu1 %v936_v6 }
  0x42   :  { %480 = vmatpush.bf16.msrb.mxu3 %v776_v8 }
  0x44   :  { %491 = vmatpush.bf16.msrb.mxu0 %v864_v15 }
  0x45   :  { %505 = vmatpush.bf16.msrb.mxu1 %v928_v16 }
  0x46   :  { %481 = vmatpush.bf16.msrb.mxu3 %v768_v17 }
  0x48   :  { %492 = vmatpush.bf16.msrb.mxu0 %v856_v23 }
  0x49   :  { %482 = vmatmul.bf16.vlgmr.msrb.gmra.mxu3 %v1306_v48  ;;  %506 = vmatpush.bf16.msrb.mxu1 %v920_v25  ;;  %v1092_v48 = vld [vmem:[#allocation8 + $0x78] sm:$0xff] }
  0x4a   :  { %664 = vmatpush.bf16.msra.mxu3 %v1084_v22  ;;  %962 = vmatmul.msk.bf16.vlgmr.msrb.gmra.mxu2 %vm407_vm1, %v1301_v13  ;;  %v1081_v13 = vld [vmem:[#allocation8 + $0x20] sm:$0xff] }
  0x4b   :  { %678 = vmatpush.bf16.msra.mxu2 %v1092_v48 }
  0x4c   :  { %493 = vmatpush.bf16.msrb.mxu0 %v848_v31 }
  0x4d   :  { %507 = vmatpush.bf16.msrb.mxu1 %v912_v32 }
  0x4e   :  { %665 = vmatpush.bf16.msra.mxu3 %v1083_v30 }
  0x4f   :  { %679 = vmatpush.bf16.msra.mxu2 %v1091_v50 }
  0x50   :  { %494 = vmatpush.bf16.msrb.mxu0 %v840_v38 }
  0x51   :  { %508 = vmatpush.bf16.msrb.mxu1 %v904_v39 }
  0x52   :  { %666 = vmatpush.bf16.msra.mxu3 %v1082_v37 }
  0x53   :  { %680 = vmatpush.bf16.msra.mxu2 %v1090_v51 }
  0x54   :  { %495 = vmatpush.bf16.msrb.mxu0 %v832_v43 }
  0x55   :  { %509 = vmatpush.bf16.msrb.mxu1 %v896_v44 }
  0x56   :  { %667 = vmatpush.bf16.msra.mxu3 %v1081_v13 }
  0x57   :  { %496 = vmatmul.bf16.vlgmr.msrb.gmra.mxu0 %v1310_v55  ;;  %681 = vmatpush.bf16.msra.mxu2 %v1089_v53 }
  0x58   :  { %510 = vmatmul.bf16.vlgmr.msrb.gmra.mxu1 %v1308_v52  ;;  %v1088_v52 = vld [vmem:[#allocation8 + $0x58] sm:$0xff] }
  0x5a   :  { %668 = vmatpush.bf16.msra.mxu3 %v1080_v45 }
  0x5b   :  { %682 = vmatpush.bf16.msra.mxu2 %v1088_v52 }
  0x5e   :  { %669 = vmatpush.bf16.msra.mxu3 %v1079_v46 }
  0x5f   :  { %683 = vmatpush.bf16.msra.mxu2 %v1087_v58 }
  0x62   :  { %670 = vmatpush.bf16.msra.mxu3 %v1078_v47 }
  0x63   :  { %684 = vmatpush.bf16.msra.mxu2 %v1086_v62 }
  0x66   :  { %671 = vmatpush.bf16.msra.mxu3 %v1077_v49 }
  0x67   :  { %685 = vmatpush.bf16.msra.mxu2 %v1085_v3 }
  0xac   :  { %v469_v59 = vpop.f32.mrf.mxu3 }
  0xb4   :  { %v427_v55 = vpop.f32.mrf.mxu0  ;;  %v471_v6 = vpop.f32.mrf.mxu3 }
  0xb5   :  { %v441_v56 = vpop.f32.mrf.mxu1  ;;  %v428_v60 = vadd.f32 %v427_v55, %v148_v57 }
  0xb7   :  { %v442_v2 = vadd.f32 %v441_v56, %v428_v60 }
  0xbc   :  { %v455_v61 = vpop.f32.mrf.mxu2  ;;  %v429_v63 = vpop.f32.mrf.mxu0 }
  0xbd   :  { %v430_v0 = vadd.f32 %v429_v63, %v148_v57  ;;  %v443_v1 = vpop.f32.mrf.mxu1  ;;  %v456_v5 = vadd.f32 %v455_v61, %v442_v2 }
  0xbf   :  { %v444_v4 = vadd.f32 %v443_v1, %v430_v0  ;;  %v470_v9 = vadd.f32 %v469_v59, %v456_v5 }
  0xc4   :  { %v457_v7 = vpop.f32.mrf.mxu2 }
  0xc5   :  { %v458_v8 = vadd.f32 %v457_v7, %v444_v4 }
  0xc7   :  { %v472_v10 = vadd.f32 %v471_v6, %v458_v8 }
  0xc9   :  { %v530_v11 = vpack.c.bf16 %v472_v10, %v470_v9 }
  0xcb   :  { %672 = vmatmul.bf16.vlgmr.msra.gmra.mxu3 %v530_v11 }
  0xcc   :  { %v483_v12 = vpop.f32.mrf.mxu3 }
  0xcd   :  { %v484_v16 = vadd.f32 %v483_v12, %v149_v14  ;;  %v525_v18 = vpop.f32.mrf.mxu2 }
  0xd4   :  { %v497_v15 = vpop.f32.mrf.mxu0  ;;  %v485_v19 = vpop.f32.mrf.mxu3 }
  0xd5   :  { %v511_v17 = vpop.f32.mrf.mxu1  ;;  %v498_v20 = vadd.f32 %v497_v15, %v484_v16  ;;  %v486_v21 = vadd.f32 %v485_v19, %v149_v14  ;;  %v527_v28 = vpop.f32.mrf.mxu2 }
  0xd7   :  { %v512_v23 = vadd.f32 %v511_v17, %v498_v20 }
  0xd9   :  { %v526_v29 = vadd.f32 %v525_v18, %v512_v23 }
  0xdc   :  { %v499_v22 = vpop.f32.mrf.mxu0 }
  0xdd   :  { %v500_v25 = vadd.f32 %v499_v22, %v486_v21  ;;  %v513_v26 = vpop.f32.mrf.mxu1 }
  0xdf   :  { %v514_v27 = vadd.f32 %v513_v26, %v500_v25 }
  0xe1   :  { %v528_v30 = vadd.f32 %v527_v28, %v514_v27 }
  0xe3   :  { %v531_v31 = vpack.c.bf16 %v528_v30, %v526_v29 }
  0xe5   :  { %686 = vmatmul.bf16.vlgmr.msra.gmra.mxu2 %v531_v31 }
 0x14e   :  { %v673_v32 = vpop.f32.mrf.mxu3 }
 0x14f   :  { %v674_v34 = vadd.f32 %v1104_v33, %v673_v32 }
 0x156   :  { %v675_v37 = vpop.f32.mrf.mxu3 }
 0x157   :  { %v676_v38 = vadd.f32 %v1104_v33, %v675_v37 }
 0x168   :  { %v687_v35 = vpop.f32.mrf.mxu2 }
 0x169   :  { %v688_v36 = vadd.f32 %v687_v35, %v674_v34 }
 0x16b   :  { %692 = vmax.xlane.f32.xlu0 %v688_v36 }
 0x170   :  { %v689_v39 = vpop.f32.mrf.mxu2 }
 0x171   :  { %v690_v40 = vadd.f32 %v689_v39, %v676_v38 }
 0x173   :  { %694 = vmax.xlane.f32.xlu0 %v690_v40 }
 0x1de   :  { %v693_v41 = vpop.xlane.xlu0 %692 }
 0x1df   :  { %v696_v42 = vsub.f32 %v688_v36, %v693_v41 }
 0x1e1   :  { %v698_v24 = vmul.f32 1.442695, %v696_v42 }
 0x1e3   :  { %1105 = vpow2.f32 %v698_v24 }
 0x1e6   :  { %v695_v43 = vpop.xlane.xlu0 %694 }
 0x1e7   :  { %v697_v44 = vsub.f32 %v690_v40, %v695_v43 }
 0x1e9   :  { %v1106_v13 = vpop.eup %1105  ;;  %v700_v45 = vmul.f32 1.442695, %v697_v44 }
 0x1ea   :  { %702 = vadd.xlane.f32.xlu1 %v1106_v13 }
 0x1eb   :  { %1107 = vpow2.f32 %v700_v45 }
 0x1f1   :  { %v1108_v46 = vpop.eup %1107 }
 0x1f2   :  { %704 = vadd.xlane.f32.xlu1 %v1108_v46 }
 0x25d   :  { %v703_v47 = vpop.xlane.xlu1 %702 }
 0x25e   :  { %1109 = vrcp.f32 %v703_v47  ;;  %v717_v53 = vand.u32 2147483648, %v703_v47  ;;  %v715_v52 = vand.u32 2147483647, %v703_v47  ;;  %vm711_vm3 = vweird.f32 %v703_v47 }
 0x260   :  { %v718_v57 = vor.u32 1.1754944e-38, %v717_v53  ;;  %vm716_vm5 = vcmp.eq.f32.partialorder %v715_v52, 8.507059e+37 }
 0x264   :  { %v1110_v48 = vpop.eup %1109 }
 0x265   :  { %v707_v49 = vmul.f32 %v1110_v48, %v703_v47  ;;  %v705_v50 = vpop.xlane.xlu1 %704  ;;  %vm712_vm2 = vweird.f32 %v1110_v48 }
 0x266   :  { %1111 = vrcp.f32 %v705_v50  ;;  %vm713_vm4 = vmor %vm711_vm3, %vm712_vm2  ;;  %v732_v63 = vand.u32 2147483648, %v705_v50  ;;  %v730_v1 = vand.u32 2147483647, %v705_v50  ;;  %vm726_vm7 = vweird.f32 %v705_v50 }
 0x267   :  { %v708_v51 = vsub.f32 1.0, %v707_v49 }
 0x268   :  { %v733_v3 = vor.u32 1.1754944e-38, %v732_v63  ;;  %vm731_vm9 = vcmp.eq.f32.partialorder %v730_v1, 8.507059e+37 }
 0x269   :  { %v709_v54 = vmul.f32 %v1110_v48, %v708_v51 }
 0x26b   :  { %v710_v55 = vadd.f32 %v1110_v48, %v709_v54 }
 0x26c   :  { %v1112_v56 = vpop.eup %1111 }
 0x26d   :  { %v722_v58 = vmul.f32 %v1112_v56, %v705_v50  ;;  %v714_v59 = vsel %vm713_vm4, %v1110_v48, %v710_v55  ;;  %vm727_vm6 = vweird.f32 %v1112_v56 }
 0x26e   :  { %v719_v60 = vsel %vm716_vm5, %v718_v57, %v714_v59  ;;  %vm728_vm8 = vmor %vm726_vm7, %vm727_vm6 }
 0x26f   :  { %v723_v61 = vsub.f32 1.0, %v722_v58  ;;  %v736_v62 = vmul.f32 %v1106_v13, %v719_v60 }
 0x271   :  { %v724_v0 = vmul.f32 %v1112_v56, %v723_v61  ;;  %738 = vst [vmem:[#allocation10] sm:$0xff] %v736_v62 }
 0x273   :  { %v725_v2 = vadd.f32 %v1112_v56, %v724_v0 }
 0x275   :  { %v729_v4 = vsel %vm728_vm8, %v1112_v56, %v725_v2 }
 0x276   :  { %v734_v5 = vsel %vm731_vm9, %v733_v3, %v729_v4 }
 0x277   :  { %v737_v6 = vmul.f32 %v1108_v46, %v734_v5 }
 0x279   :  { %739 = vst [vmem:[#allocation10 + $0x8] sm:$0xff] %v737_v6 }
 0x27a   :  { %752 = dma.vmem_to_hbm [thread:$0]  %s745_s17, 256, %s747_s20, [#allocation4], %s1242_s26, %s1242_s26, %s1243_s27  }
 0x27b   :  { %1239 = dma.done.wait [#allocation4], 256  }
 0x27c   :  { %1240 = vsyncadd [#allocation4], 4294967040 }
 0x27d   :  { %757 = vsyncpa [#allocation3], 1 }
 0x27e   :  { %758 = vsyncpa [#allocation6], 1 }
 0x27f   :  { %759 = vsyncpa [#allocation9], 1 }
 0x280   :  { %760 = vsyncpa [#allocation4], 1 }

</bundles_post_ra>
